<compile_context>
chip_gen: v6e
topology: v6e:2x2x1
jax: 0.10.0
libtpu: 0.0.40
codegen_flags: <defaults>
</compile_context>

<pallas_src>
from functools import partial

import jax
import jax.numpy as jnp
from jax.experimental import pallas as pl
from jax.experimental.pallas import tpu as pltpu


def _round_up(x, m):
    return ((x + m - 1) // m) * m


@partial(jax.jit, static_argnames=("dilation", "time_tile"))
def wavenet_block(seq, w_dcc, w_res, b_res, w_skip, b_skip, *, dilation, time_tile=512):
    """seq: (B, residual_dim, T) in PyTorch NCW convention."""
    B, R, T = seq.shape
    conv_dim, R_w, K = w_dcc.shape
    assert R_w == R and K == 2 and conv_dim % 2 == 0
    half = conv_dim // 2
    S = w_skip.shape[0]
    d = int(dilation)
    assert d >= 1

    # ---- tile / padding choices ---------------------------------------------
    # Lane-dense channel padding (multiples of 128) and sublane-aligned time
    # tiles.  The carry scheme needs d < tT.
    Rp = _round_up(R, 128)
    Sp = _round_up(S, 128)
    Hp = _round_up(half, 128)
    tT = max(min(int(time_tile), _round_up(T, 8)), _round_up(d + 1, 8))
    tT = _round_up(tT, 8)
    Tp = _round_up(T, tT)
    nT = Tp // tT

    f32 = jnp.float32

    # ---- wrapper glue: NCW -> NTC, zero-pad time & channels -------------------
    x = jnp.transpose(seq, (0, 2, 1))                           # (B, T, R)
    x = jnp.pad(x, ((0, 0), (0, Tp - T), (0, Rp - R)))          # (B, Tp, Rp)

    # Dilated-conv weights, one per tap; act half in lanes [:Hp], gate half in
    # lanes [Hp:2Hp] so the in-kernel GLU split is a clean 128-lane slice.
    W0 = jnp.transpose(w_dcc[:, :, 0]).astype(f32)              # (R, conv_dim) tap at t-d
    W1 = jnp.transpose(w_dcc[:, :, 1]).astype(f32)              # (R, conv_dim) tap at t

    def pack_tap(W):
        Wp = jnp.zeros((Rp, 2 * Hp), f32)
        Wp = Wp.at[:R, :half].set(W[:, :half])                  # activation half
        Wp = Wp.at[:R, Hp:Hp + half].set(W[:, half:])           # gate half
        return Wp

    W0p, W1p = pack_tap(W0), pack_tap(W1)

    # Fused residual + skip 1x1 convs: (Hp, Rp + Sp) weight, (1, Rp + Sp) bias.
    Wrs = jnp.zeros((Hp, Rp + Sp), f32)
    Wrs = Wrs.at[:half, :R].set(jnp.transpose(w_res[:, :, 0]).astype(f32))
    Wrs = Wrs.at[:half, Rp:Rp + S].set(jnp.transpose(w_skip[:, :, 0]).astype(f32))
    brs = jnp.zeros((1, Rp + Sp), f32)
    brs = brs.at[0, :R].set(b_res.astype(f32))
    brs = brs.at[0, Rp:Rp + S].set(b_skip.astype(f32))

    # ---- kernel ---------------------------------------------------------------
    def kernel(x_ref, w0_ref, w1_ref, wrs_ref, brs_ref,
               out_ref, skip_ref, carry_ref, xs_ref):
        i = pl.program_id(1)                       # time-tile index (sequential)

        # First tile of every batch: causal padding -> zero carry.
        @pl.when(i == 0)
        def _():
            carry_ref[...] = jnp.zeros_like(carry_ref)

        x_t = x_ref[0]                             # (tT, Rp), input dtype

        # Assemble the causally shifted tile xs[t] = x_global[t - d] in VMEM:
        # rows [0, d) come from the carry (tail of the previous tile / zeros),
        # rows [d, tT) come from the current tile.  Input is read from HBM once.
        xs_ref[pl.ds(0, d), :] = carry_ref[...]
        xs_ref[pl.ds(d, tT - d), :] = x_t[:tT - d]
        # Stash the carry for the next time tile.
        carry_ref[...] = x_t[tT - d:]
        xs_t = xs_ref[...]

        # Dilated causal conv (kernel_size=2): two MXU matmuls, act+gate fused
        # on the lane axis.  f32 accumulation via preferred_element_type.
        dcc = (jnp.dot(xs_t, w0_ref[...], preferred_element_type=jnp.float32)
               + jnp.dot(x_t, w1_ref[...], preferred_element_type=jnp.float32))
        act = dcc[:, :Hp]
        gate = dcc[:, Hp:]
        glu = jnp.tanh(act) * jax.nn.sigmoid(gate)               # (tT, Hp) f32

        # Fused residual + skip 1x1 convs: one MXU matmul + bias, then a
        # 128-lane-aligned split.
        rs = jnp.dot(glu, wrs_ref[...], preferred_element_type=jnp.float32) + brs_ref[...]
        out_ref[0] = (x_t.astype(jnp.float32) + rs[:, :Rp]).astype(out_ref.dtype)
        skip_ref[0] = rs[:, Rp:].astype(skip_ref.dtype)

    full = lambda shape: pl.BlockSpec(shape, lambda b, i: (0,) * len(shape))

    out, skip = pl.pallas_call(
        kernel,
        out_shape=(
            jax.ShapeDtypeStruct((B, Tp, Rp), seq.dtype),
            jax.ShapeDtypeStruct((B, Tp, Sp), seq.dtype),
        ),
        grid_spec=pltpu.PrefetchScalarGridSpec(
            num_scalar_prefetch=0,
            grid=(B, nT),                                   # time axis last (carry)
            in_specs=[
                pl.BlockSpec((1, tT, Rp), lambda b, i: (b, i, 0)),   # x tile
                full((Rp, 2 * Hp)),                                  # tap t-d weights
                full((Rp, 2 * Hp)),                                  # tap t   weights
                full((Hp, Rp + Sp)),                                 # fused 1x1 weights
                full((1, Rp + Sp)),                                  # fused bias
            ],
            out_specs=[
                pl.BlockSpec((1, tT, Rp), lambda b, i: (b, i, 0)),   # seq + resid
                pl.BlockSpec((1, tT, Sp), lambda b, i: (b, i, 0)),   # skip
            ],
            scratch_shapes=[
                pltpu.VMEM((d, Rp), seq.dtype),      # carry: last d rows of prev tile
                pltpu.VMEM((tT, Rp), seq.dtype),     # assembled shifted tile
            ],
        ),
        compiler_params=pltpu.CompilerParams(
            dimension_semantics=("parallel", "arbitrary")),
        input_output_aliases={0: 0},                 # residual output reuses x buffer
    )(x, W0p, W1p, Wrs, brs)

    # Back to PyTorch NCW layout, dropping the lane/time padding.
    out = jnp.transpose(out[:, :T, :R], (0, 2, 1))
    skip = jnp.transpose(skip[:, :T, :S], (0, 2, 1))
    return out, skip


def _reference_forward(seq, w_dcc, w_res, b_res, w_skip, b_skip, d):
    """Pure-JAX reference mirroring the PyTorch module (NCW layout)."""
    B, R, T = seq.shape
    x_prev = jnp.pad(seq, ((0, 0), (0, 0), (d, 0)))[:, :, :T]
    dcc = (jnp.einsum('cr,brt->bct', w_dcc[:, :, 0], x_prev)
           + jnp.einsum('cr,brt->bct', w_dcc[:, :, 1], seq))
    half = dcc.shape[1] // 2
    glu = jnp.tanh(dcc[:, :half]) * jax.nn.sigmoid(dcc[:, half:])
    resid = jnp.einsum('oc,bct->bot', w_res[:, :, 0], glu) + b_res[None, :, None]
    skip = jnp.einsum('oc,bct->bot', w_skip[:, :, 0], glu) + b_skip[None, :, None]
    return seq + resid, skip


def _run_case(key, B, residual_dim, T, conv_dim, skip_dim, dilation, time_tile):
    half = conv_dim // 2
    ks = jax.random.split(key, 6)
    seq = jax.random.normal(ks[0], (B, residual_dim, T), jnp.float32)
    w_dcc = 0.3 * jax.random.normal(ks[1], (conv_dim, residual_dim, 2), jnp.float32)
    w_res = 0.3 * jax.random.normal(ks[2], (residual_dim, half, 1), jnp.float32)
    b_res = 0.1 * jax.random.normal(ks[3], (residual_dim,), jnp.float32)
    w_skip = 0.3 * jax.random.normal(ks[4], (skip_dim, half, 1), jnp.float32)
    b_skip = 0.1 * jax.random.normal(ks[5], (skip_dim,), jnp.float32)

    out, skip = wavenet_block(seq, w_dcc, w_res, b_res, w_skip, b_skip,
                              dilation=dilation, time_tile=time_tile)
    out = jax.block_until_ready(out)
    skip = jax.block_until_ready(skip)

    ref_out, ref_skip = _reference_forward(seq, w_dcc, w_res, b_res, w_skip, b_skip, dilation)
    assert out.shape == (B, residual_dim, T) and skip.shape == (B, skip_dim, T)
    assert jnp.allclose(out, ref_out, atol=1e-4, rtol=1e-4)
    assert jnp.allclose(skip, ref_skip, atol=1e-4, rtol=1e-4)


if __name__ == "__main__":
    key = jax.random.PRNGKey(0)
    k1, k2 = jax.random.split(key)

    # Case 1: small shapes matching the module defaults (single time tile).
    _run_case(k1, B=2, residual_dim=4, T=16, conv_dim=8, skip_dim=6,
              dilation=2, time_tile=512)

    # Case 2: multiple time tiles — exercises the cross-tile causal carry.
    _run_case(k2, B=1, residual_dim=8, T=40, conv_dim=16, skip_dim=6,
              dilation=4, time_tile=16)

    print("KERNEL_OK")
</pallas_src>

<mosaic_0001>
module attributes {stable_mosaic.version = 11 : i64} {
  func.func @kernel(%arg0: i32, %arg1: i32, %arg2: memref<1x16x128xf32, #tpu.memory_space<vmem>>, %arg3: memref<128x256xf32, #tpu.memory_space<vmem>>, %arg4: memref<128x256xf32, #tpu.memory_space<vmem>>, %arg5: memref<128x256xf32, #tpu.memory_space<vmem>>, %arg6: memref<1x256xf32, #tpu.memory_space<vmem>>, %arg7: memref<1x16x128xf32, #tpu.memory_space<vmem>>, %arg8: memref<1x16x128xf32, #tpu.memory_space<vmem>>, %arg9: memref<2x128xf32, #tpu.memory_space<vmem>>, %arg10: memref<16x128xf32, #tpu.memory_space<vmem>>) attributes {dimension_semantics = [#tpu.dimension_semantics<parallel>, #tpu.dimension_semantics<arbitrary>], iteration_bounds = array<i64: 2, 1>, scalar_prefetch = 0 : i64, scratch_operands = 2 : i64, tpu.core_type = #tpu.core_type<tc>, window_params = [{transform_indices = @transform_0, window_bounds = array<i64: 1, 16, 128>}, {pipeline_mode = #tpu.pipeline_mode<synchronous>, transform_indices = @transform_1, window_bounds = array<i64: 128, 256>}, {pipeline_mode = #tpu.pipeline_mode<synchronous>, transform_indices = @transform_2, window_bounds = array<i64: 128, 256>}, {pipeline_mode = #tpu.pipeline_mode<synchronous>, transform_indices = @transform_3, window_bounds = array<i64: 128, 256>}, {pipeline_mode = #tpu.pipeline_mode<synchronous>, transform_indices = @transform_4, window_bounds = array<i64: 1, 256>}, {transform_indices = @transform_5, window_bounds = array<i64: 1, 16, 128>}, {transform_indices = @transform_6, window_bounds = array<i64: 1, 16, 128>}]} {
    %c0_i32 = arith.constant 0 : i32
    %0 = arith.cmpi eq, %arg1, %c0_i32 : i32
    %1 = arith.extui %0 : i1 to i32
    %c0_i32_0 = arith.constant 0 : i32
    %2 = arith.cmpi ne, %1, %c0_i32_0 : i32
    scf.if %2 {
      %cst_29 = arith.constant 0.000000e+00 : f32
      %40 = vector.broadcast %cst_29 : f32 to vector<2x128xf32>
      %c0_30 = arith.constant 0 : index
      %c0_31 = arith.constant 0 : index
      %41 = vector.load %arg9[%c0_30, %c0_31] : memref<2x128xf32, #tpu.memory_space<vmem>>, vector<2x128xf32>
      tpu.vector_store %arg9[%c0_30, %c0_31], %40 {strides = array<i32>} : memref<2x128xf32, #tpu.memory_space<vmem>>, vector<2x128xf32>,
    } else {
    }
    %c0 = arith.constant 0 : index
    %c0_1 = arith.constant 0 : index
    %c0_2 = arith.constant 0 : index
    %3 = vector.load %arg2[%c0, %c0_1, %c0_2] : memref<1x16x128xf32, #tpu.memory_space<vmem>>, vector<1x16x128xf32>
    %4 = vector.shape_cast %3 : vector<1x16x128xf32> to vector<16x128xf32>
    %c0_3 = arith.constant 0 : index
    %c0_4 = arith.constant 0 : index
    %5 = vector.load %arg9[%c0_3, %c0_4] : memref<2x128xf32, #tpu.memory_space<vmem>>, vector<2x128xf32>
    %c0_5 = arith.constant 0 : index
    %c0_6 = arith.constant 0 : index
    %6 = vector.load %arg10[%c0_5, %c0_6] : memref<16x128xf32, #tpu.memory_space<vmem>>, vector<2x128xf32>
    tpu.vector_store %arg10[%c0_5, %c0_6], %5 {strides = array<i32>} : memref<16x128xf32, #tpu.memory_space<vmem>>, vector<2x128xf32>,
    %7 = vector.extract_strided_slice %4 {offsets = [0, 0], sizes = [14, 128], strides = [1, 1]} : vector<16x128xf32> to vector<14x128xf32>
    %c2 = arith.constant 2 : index
    %c0_7 = arith.constant 0 : index
    %8 = vector.load %arg10[%c2, %c0_7] : memref<16x128xf32, #tpu.memory_space<vmem>>, vector<14x128xf32>
    tpu.vector_store %arg10[%c2, %c0_7], %7 {strides = array<i32>} : memref<16x128xf32, #tpu.memory_space<vmem>>, vector<14x128xf32>,
    %9 = vector.extract_strided_slice %4 {offsets = [14, 0], sizes = [2, 128], strides = [1, 1]} : vector<16x128xf32> to vector<2x128xf32>
    %c0_8 = arith.constant 0 : index
    %c0_9 = arith.constant 0 : index
    %10 = vector.load %arg9[%c0_8, %c0_9] : memref<2x128xf32, #tpu.memory_space<vmem>>, vector<2x128xf32>
    tpu.vector_store %arg9[%c0_8, %c0_9], %9 {strides = array<i32>} : memref<2x128xf32, #tpu.memory_space<vmem>>, vector<2x128xf32>,
    %c0_10 = arith.constant 0 : index
    %c0_11 = arith.constant 0 : index
    %11 = vector.load %arg10[%c0_10, %c0_11] : memref<16x128xf32, #tpu.memory_space<vmem>>, vector<16x128xf32>
    %c0_12 = arith.constant 0 : index
    %c0_13 = arith.constant 0 : index
    %12 = vector.load %arg3[%c0_12, %c0_13] : memref<128x256xf32, #tpu.memory_space<vmem>>, vector<128x256xf32>
    %cst = arith.constant dense<0.000000e+00> : vector<16x256xf32>
    %13 = tpu.matmul %11, %12, %cst {dimension_numbers = #tpu.dot_dimension_numbers<[1], [0], [0], [1], [0, 0, 1, 1], [], []>} : vector<16x128xf32>, vector<128x256xf32>, vector<16x256xf32> -> vector<16x256xf32>
    %c0_14 = arith.constant 0 : index
    %c0_15 = arith.constant 0 : index
    %14 = vector.load %arg4[%c0_14, %c0_15] : memref<128x256xf32, #tpu.memory_space<vmem>>, vector<128x256xf32>
    %cst_16 = arith.constant dense<0.000000e+00> : vector<16x256xf32>
    %15 = tpu.matmul %4, %14, %cst_16 {dimension_numbers = #tpu.dot_dimension_numbers<[1], [0], [0], [1], [0, 0, 1, 1], [], []>} : vector<16x128xf32>, vector<128x256xf32>, vector<16x256xf32> -> vector<16x256xf32>
    %16 = arith.addf %13, %15 : vector<16x256xf32>
    %17 = vector.extract_strided_slice %16 {offsets = [0, 0], sizes = [16, 128], strides = [1, 1]} : vector<16x256xf32> to vector<16x128xf32>
    %18 = vector.extract_strided_slice %16 {offsets = [0, 128], sizes = [16, 128], strides = [1, 1]} : vector<16x256xf32> to vector<16x128xf32>
    %19 = math.tanh %17 : vector<16x128xf32>
    %20 = arith.negf %18 : vector<16x128xf32>
    %21 = math.exp %20 : vector<16x128xf32>
    %cst_17 = arith.constant 1.000000e+00 : f32
    %22 = vector.broadcast %cst_17 : f32 to vector<16x128xf32>
    %23 = arith.addf %22, %21 : vector<16x128xf32>
    %24 = arith.divf %22, %23 : vector<16x128xf32>
    %25 = arith.mulf %19, %24 : vector<16x128xf32>
    %c0_18 = arith.constant 0 : index
    %c0_19 = arith.constant 0 : index
    %26 = vector.load %arg5[%c0_18, %c0_19] : memref<128x256xf32, #tpu.memory_space<vmem>>, vector<128x256xf32>
    %cst_20 = arith.constant dense<0.000000e+00> : vector<16x256xf32>
    %27 = tpu.matmul %25, %26, %cst_20 {dimension_numbers = #tpu.dot_dimension_numbers<[1], [0], [0], [1], [0, 0, 1, 1], [], []>} : vector<16x128xf32>, vector<128x256xf32>, vector<16x256xf32> -> vector<16x256xf32>
    %c0_21 = arith.constant 0 : index
    %c0_22 = arith.constant 0 : index
    %28 = vector.load %arg6[%c0_21, %c0_22] : memref<1x256xf32, #tpu.memory_space<vmem>>, vector<1x256xf32>
    %29 = vector.broadcast %28 : vector<1x256xf32> to vector<16x256xf32>
    %30 = arith.addf %27, %29 : vector<16x256xf32>
    %31 = vector.extract_strided_slice %30 {offsets = [0, 0], sizes = [16, 128], strides = [1, 1]} : vector<16x256xf32> to vector<16x128xf32>
    %32 = arith.addf %4, %31 : vector<16x128xf32>
    %c0_23 = arith.constant 0 : index
    %c0_24 = arith.constant 0 : index
    %c0_25 = arith.constant 0 : index
    %33 = vector.load %arg7[%c0_23, %c0_24, %c0_25] : memref<1x16x128xf32, #tpu.memory_space<vmem>>, vector<1x16x128xf32>
    %34 = vector.shape_cast %33 : vector<1x16x128xf32> to vector<16x128xf32>
    %35 = vector.shape_cast %32 : vector<16x128xf32> to vector<1x16x128xf32>
    tpu.vector_store %arg7[%c0_23, %c0_24, %c0_25], %35 {strides = array<i32>} : memref<1x16x128xf32, #tpu.memory_space<vmem>>, vector<1x16x128xf32>,
    %36 = vector.extract_strided_slice %30 {offsets = [0, 128], sizes = [16, 128], strides = [1, 1]} : vector<16x256xf32> to vector<16x128xf32>
    %c0_26 = arith.constant 0 : index
    %c0_27 = arith.constant 0 : index
    %c0_28 = arith.constant 0 : index
    %37 = vector.load %arg8[%c0_26, %c0_27, %c0_28] : memref<1x16x128xf32, #tpu.memory_space<vmem>>, vector<1x16x128xf32>
    %38 = vector.shape_cast %37 : vector<1x16x128xf32> to vector<16x128xf32>
    %39 = vector.shape_cast %36 : vector<16x128xf32> to vector<1x16x128xf32>
    tpu.vector_store %arg8[%c0_26, %c0_27, %c0_28], %39 {strides = array<i32>} : memref<1x16x128xf32, #tpu.memory_space<vmem>>, vector<1x16x128xf32>,
    return
  }
  func.func @transform_0(%arg0: i32, %arg1: i32) -> (i32, i32, i32) {
    %c0_i32 = arith.constant 0 : i32
    %c0_i32_0 = arith.constant 0 : i32
    return %arg0, %arg1, %c0_i32 : i32, i32, i32
  }
  func.func @transform_1(%arg0: i32, %arg1: i32) -> (i32, i32) {
    %c0_i32 = arith.constant 0 : i32
    %c0_i32_0 = arith.constant 0 : i32
    %c0_i32_1 = arith.constant 0 : i32
    return %c0_i32, %c0_i32_0 : i32, i32
  }
  func.func @transform_2(%arg0: i32, %arg1: i32) -> (i32, i32) {
    %c0_i32 = arith.constant 0 : i32
    %c0_i32_0 = arith.constant 0 : i32
    %c0_i32_1 = arith.constant 0 : i32
    return %c0_i32, %c0_i32_0 : i32, i32
  }
  func.func @transform_3(%arg0: i32, %arg1: i32) -> (i32, i32) {
    %c0_i32 = arith.constant 0 : i32
    %c0_i32_0 = arith.constant 0 : i32
    %c0_i32_1 = arith.constant 0 : i32
    return %c0_i32, %c0_i32_0 : i32, i32
  }
  func.func @transform_4(%arg0: i32, %arg1: i32) -> (i32, i32) {
    %c0_i32 = arith.constant 0 : i32
    %c0_i32_0 = arith.constant 0 : i32
    %c0_i32_1 = arith.constant 0 : i32
    return %c0_i32, %c0_i32_0 : i32, i32
  }
  func.func @transform_5(%arg0: i32, %arg1: i32) -> (i32, i32, i32) {
    %c0_i32 = arith.constant 0 : i32
    %c0_i32_0 = arith.constant 0 : i32
    return %arg0, %arg1, %c0_i32 : i32, i32, i32
  }
  func.func @transform_6(%arg0: i32, %arg1: i32) -> (i32, i32, i32) {
    %c0_i32 = arith.constant 0 : i32
    %c0_i32_0 = arith.constant 0 : i32
    return %arg0, %arg1, %c0_i32 : i32, i32, i32
  }
}

</mosaic_0001>

<bundles_post_ra>
// kernel: wavenet_block.1
= control target key start
LH: loop header
LB: loop body
LE: loop exit
PB: predicated region body
PF: predicated region fallthrough
CT: control target
= control target key end

     0   :  { %s974_s21 = smov 0   ;;  %s976_s22 = smov 0   ;;  %s1330_s0 = inlined_call_operand.vmem [shape: f32[2,16,128], index: 0, kind: input, shape index: {}, may-alias: {0,5}]   ;;  %s1331_s1 = inlined_call_operand.vmem [shape: f32[128,256], index: 1, kind: input, shape index: {}]   ;;  %s1332_s2 = inlined_call_operand.vmem [shape: f32[128,256], index: 2, kind: input, shape index: {}]   ;;  %s1333_s3 = inlined_call_operand.vmem [shape: f32[128,256], index: 3, kind: input, shape index: {}]   ;;  %s1334_s4 = inlined_call_operand.vmem [shape: f32[1,256], index: 4, kind: input, shape index: {}]   ;;  %s1335_s5 = inlined_call_operand.vmem [shape: f32[2,16,128], index: 5, kind: output, shape index: {0}, may-alias: {0,5}]   ;;  %s1336_s6 = inlined_call_operand.vmem [shape: f32[2,16,128], index: 6, kind: output, shape index: {1}]  }
   0x1   :  { %s978_s23 = smov 0  }
   0x2 LB: > { %s29_s24 = sadd.s32 1, %s932_s22  ;;  %p831_p0 = scmp.ge.s32.totalorder %s936_s23, 1  ;;  %s936_s23 = sphi %s978_s23, %s17_s23   ;;  %s932_s22 = sphi %s976_s22, %s1338_s22   ;;  %s928_s21 = sphi %s974_s21, %s1337_s21  }
   0x3   : > { %p31_p1 = scmp.ge.s32.totalorder %s29_s24, 2  ;;  %p238_p2 = scmp.lt.s32.totalorder %s936_s23, 3 }
   0x5   : > { %s1340_s24 = smov (%p31_p1, %s29_s24), 0  ;;  %p239_p3 = pnand %p831_p0, %p238_p2 }
   0x6   : > { %p286_p4 = scmp.lt.s32.totalorder (!%p239_p3), %s928_s21, 1 }
   0x7   : > { %242 = sbr.rel (%p239_p3) target bundleno = 479 (0x1df), region = 40 }
   0xc   : > { %v392_v0 = vld [vmem:[%s1332_s2 + $0xf8] sm:$0xff]  ;;  %v391_v2 = vld [vmem:[%s1332_s2 + $0xf0] sm:$0xff]  ;;  %v390_v4 = vld [vmem:[%s1332_s2 + $0xe8] sm:$0xff]  ;;  %v938_v6 = vmov 0.0   ;;  %s1342_s21 = smov (!%p286_p4, %s928_s21), 1 }
   0xd   : > { %v360_v1 = vld [vmem:[%s1331_s1 + $0xf8] sm:$0xff]  ;;  %393 = vmatprep.subr.mxu0 %v392_v0  ;;  %v359_v3 = vld [vmem:[%s1331_s1 + $0xf0] sm:$0xff]  ;;  %v358_v5 = vld [vmem:[%s1331_s1 + $0xe8] sm:$0xff]  ;;  %319 = vst [vmem:[#allocation2] sm:$0x3] %v938_v6  ;;  %s1107_s13 = sshll.u32 %s1342_s21, 4  ;;  %457 = vmatprep.mubr.f32.mxu0 %v938_v6 }
   0xe   : > { %470 = vmatprep.subr.mxu1 %v360_v1  ;;  %394 = vmatpush1.msra.mxu0 %v391_v2  ;;  %v389_v7 = vld [vmem:[%s1332_s2 + $0xe0] sm:$0xff]  ;;  %v388_v9 = vld [vmem:[%s1332_s2 + $0xd8] sm:$0xff]  ;;  %v387_v11 = vld [vmem:[%s1332_s2 + $0xd0] sm:$0xff]  ;;  %s293_s7 = scalar_lea.vmem %s1330_s0, %s1107_s13  ;;  %s303_s21 = scalar_lea.vmem %s1335_s5, %s1107_s13 }
   0xf   : > { %471 = vmatpush1.msra.mxu1 %v359_v3  ;;  %v357_v8 = vld [vmem:[%s1331_s1 + $0xe0] sm:$0xff]  ;;  %395 = vmatprep.subr.mxu0 %v390_v4  ;;  %v356_v10 = vld [vmem:[%s1331_s1 + $0xd8] sm:$0xff]  ;;  %v355_v12 = vld [vmem:[%s1331_s1 + $0xd0] sm:$0xff]  ;;  %s313_s27 = scalar_lea.vmem %s1336_s6, %s1107_s13 }
  0x10   : > { %472 = vmatprep.subr.mxu1 %v358_v5  ;;  %396 = vmatpush1.msra.mxu0 %v389_v7  ;;  %v386_v13 = vld [vmem:[%s1332_s2 + $0xc8] sm:$0xff]  ;;  %v385_v15 = vld [vmem:[%s1332_s2 + $0xc0] sm:$0xff]  ;;  %v384_v17 = vld [vmem:[%s1332_s2 + $0xb8] sm:$0xff] }
  0x11   : > { %473 = vmatpush1.msra.mxu1 %v357_v8  ;;  %v354_v14 = vld [vmem:[%s1331_s1 + $0xc8] sm:$0xff]  ;;  %397 = vmatprep.subr.mxu0 %v388_v9  ;;  %v353_v16 = vld [vmem:[%s1331_s1 + $0xc0] sm:$0xff]  ;;  %v352_v18 = vld [vmem:[%s1331_s1 + $0xb8] sm:$0xff] }
  0x12   : > { %474 = vmatprep.subr.mxu1 %v356_v10  ;;  %398 = vmatpush1.msra.mxu0 %v387_v11  ;;  %v383_v19 = vld [vmem:[%s1332_s2 + $0xb0] sm:$0xff]  ;;  %v382_v21 = vld [vmem:[%s1332_s2 + $0xa8] sm:$0xff]  ;;  %v381_v23 = vld [vmem:[%s1332_s2 + $0xa0] sm:$0xff] }
  0x13   : > { %475 = vmatpush1.msra.mxu1 %v355_v12  ;;  %399 = vmatprep.subr.mxu0 %v386_v13  ;;  %v351_v20 = vld [vmem:[%s1331_s1 + $0xb0] sm:$0xff]  ;;  %v350_v22 = vld [vmem:[%s1331_s1 + $0xa8] sm:$0xff]  ;;  %v349_v24 = vld [vmem:[%s1331_s1 + $0xa0] sm:$0xff] }
  0x14   : > { %476 = vmatprep.subr.mxu1 %v354_v14  ;;  %400 = vmatpush1.msra.mxu0 %v385_v15  ;;  %v380_v25 = vld [vmem:[%s1332_s2 + $0x98] sm:$0xff]  ;;  %v379_v27 = vld [vmem:[%s1332_s2 + $0x90] sm:$0xff]  ;;  %v378_v29 = vld [vmem:[%s1332_s2 + $0x88] sm:$0xff] }
  0x15   : > { %477 = vmatpush1.msra.mxu1 %v353_v16  ;;  %401 = vmatprep.subr.mxu0 %v384_v17  ;;  %v348_v26 = vld [vmem:[%s1331_s1 + $0x98] sm:$0xff]  ;;  %v347_v28 = vld [vmem:[%s1331_s1 + $0x90] sm:$0xff]  ;;  %v346_v30 = vld [vmem:[%s1331_s1 + $0x88] sm:$0xff] }
  0x16   : > { %478 = vmatprep.subr.mxu1 %v352_v18  ;;  %402 = vmatpush1.msra.mxu0 %v383_v19  ;;  %v377_v31 = vld [vmem:[%s1332_s2 + $0x80] sm:$0xff]  ;;  %v376_v33 = vld [vmem:[%s1332_s2 + $0x78] sm:$0xff]  ;;  %v375_v35 = vld [vmem:[%s1332_s2 + $0x70] sm:$0xff] }
  0x17   : > { %479 = vmatpush1.msra.mxu1 %v351_v20  ;;  %403 = vmatprep.subr.mxu0 %v382_v21  ;;  %v345_v32 = vld [vmem:[%s1331_s1 + $0x80] sm:$0xff]  ;;  %v344_v34 = vld [vmem:[%s1331_s1 + $0x78] sm:$0xff]  ;;  %v343_v36 = vld [vmem:[%s1331_s1 + $0x70] sm:$0xff] }
  0x18   : > { %480 = vmatprep.subr.mxu1 %v350_v22  ;;  %404 = vmatpush1.msra.mxu0 %v381_v23  ;;  %v374_v37 = vld [vmem:[%s1332_s2 + $0x68] sm:$0xff]  ;;  %v373_v39 = vld [vmem:[%s1332_s2 + $0x60] sm:$0xff]  ;;  %v372_v41 = vld [vmem:[%s1332_s2 + $0x58] sm:$0xff] }
  0x19   : > { %481 = vmatpush1.msra.mxu1 %v349_v24  ;;  %405 = vmatprep.subr.mxu0 %v380_v25  ;;  %v342_v38 = vld [vmem:[%s1331_s1 + $0x68] sm:$0xff]  ;;  %v341_v40 = vld [vmem:[%s1331_s1 + $0x60] sm:$0xff]  ;;  %v340_v42 = vld [vmem:[%s1331_s1 + $0x58] sm:$0xff] }
  0x1a   : > { %482 = vmatprep.subr.mxu1 %v348_v26  ;;  %406 = vmatpush1.msra.mxu0 %v379_v27  ;;  %v371_v43 = vld [vmem:[%s1332_s2 + $0x50] sm:$0xff]  ;;  %v370_v45 = vld [vmem:[%s1332_s2 + $0x48] sm:$0xff]  ;;  %v369_v47 = vld [vmem:[%s1332_s2 + $0x40] sm:$0xff] }
  0x1b   : > { %483 = vmatpush1.msra.mxu1 %v347_v28  ;;  %407 = vmatprep.subr.mxu0 %v378_v29  ;;  %v339_v44 = vld [vmem:[%s1331_s1 + $0x50] sm:$0xff]  ;;  %v338_v46 = vld [vmem:[%s1331_s1 + $0x48] sm:$0xff]  ;;  %v337_v48 = vld [vmem:[%s1331_s1 + $0x40] sm:$0xff] }
  0x1c   : > { %484 = vmatprep.subr.mxu1 %v346_v30  ;;  %408 = vmatpush1.msra.mxu0 %v377_v31  ;;  %v1149_v49 = vld [vmem:[%s293_s7] sm:$0xff]  ;;  %v1151_v50 = vld [vmem:[%s293_s7 + $0x8] sm:$0xff]  ;;  %v368_v51 = vld [vmem:[%s1332_s2 + $0x38] sm:$0xff] }
  0x1d   : > { %485 = vmatpush1.msra.mxu1 %v345_v32  ;;  %409 = vmatprep.subr.mxu0 %v376_v33  ;;  %v336_v52 = vld [vmem:[%s1331_s1 + $0x38] sm:$0xff]  ;;  %v322_v53 = vld [vmem:[#allocation2] sm:$0x3]  ;;  %324 = vst [vmem:[#allocation3 + $0x2] sm:$0xff] %v1149_v49  ;;  %325 = vst [vmem:[#allocation3 + $0xa] sm:$0x3f] %v1151_v50 }
  0x1e   : > { %486 = vmatprep.subr.mxu1 %v344_v34  ;;  %410 = vmatpush1.msra.mxu0 %v375_v35  ;;  %v367_v54 = vld [vmem:[%s1332_s2 + $0x30] sm:$0xff]  ;;  %323 = vst [vmem:[#allocation3] sm:$0x3] %v322_v53  ;;  %326 = vst [vmem:[#allocation2 - $0x6] sm:$0xc0] %v1151_v50  ;;  %v366_v56 = vld [vmem:[%s1332_s2 + $0x28] sm:$0xff] }
  0x1f   : > { %487 = vmatpush1.msra.mxu1 %v343_v36  ;;  %411 = vmatprep.subr.mxu0 %v374_v37  ;;  %v335_v55 = vld [vmem:[%s1331_s1 + $0x30] sm:$0xff]  ;;  %v334_v57 = vld [vmem:[%s1331_s1 + $0x28] sm:$0xff]  ;;  %v365_v58 = vld [vmem:[%s1332_s2 + $0x20] sm:$0xff] }
  0x20   : > { %488 = vmatprep.subr.mxu1 %v342_v38  ;;  %412 = vmatpush1.msra.mxu0 %v373_v39  ;;  %v333_v59 = vld [vmem:[%s1331_s1 + $0x20] sm:$0xff]  ;;  %v364_v60 = vld [vmem:[%s1332_s2 + $0x18] sm:$0xff]  ;;  %v363_v62 = vld [vmem:[%s1332_s2 + $0x10] sm:$0xff] }
  0x21   : > { %489 = vmatpush1.msra.mxu1 %v341_v40  ;;  %413 = vmatprep.subr.mxu0 %v372_v41  ;;  %v332_v61 = vld [vmem:[%s1331_s1 + $0x18] sm:$0xff]  ;;  %v331_v63 = vld [vmem:[%s1331_s1 + $0x10] sm:$0xff]  ;;  %v362_v0 = vld [vmem:[%s1332_s2 + $0x8] sm:$0xff] }
  0x22   : > { %490 = vmatprep.subr.mxu1 %v340_v42  ;;  %414 = vmatpush1.msra.mxu0 %v371_v43  ;;  %v330_v1 = vld [vmem:[%s1331_s1 + $0x8] sm:$0xff]  ;;  %v361_v2 = vld [vmem:[%s1332_s2] sm:$0xff]  ;;  %v594_v7 = vld [vmem:[%s1333_s3 + $0xf8] sm:$0xff] }
  0x23   : > { %491 = vmatpush1.msra.mxu1 %v339_v44  ;;  %415 = vmatprep.subr.mxu0 %v370_v45  ;;  %v329_v3 = vld [vmem:[%s1331_s1] sm:$0xff]  ;;  %v593_v8 = vld [vmem:[%s1333_s3 + $0xf0] sm:$0xff]  ;;  %v592_v9 = vld [vmem:[%s1333_s3 + $0xe8] sm:$0xff] }
  0x24   : > { %492 = vmatprep.subr.mxu1 %v338_v46  ;;  %416 = vmatpush1.msra.mxu0 %v369_v47  ;;  %v328_v5 = vld [vmem:[#allocation3 + $0x8] sm:$0xff]  ;;  %v590_v10 = vld [vmem:[%s1333_s3 + $0xd8] sm:$0xff]  ;;  %v587_v13 = vld [vmem:[%s1333_s3 + $0xc0] sm:$0xff] }
  0x25   : > { %493 = vmatpush1.msra.mxu1 %v337_v48  ;;  %417 = vmatprep.subr.mxu0 %v368_v51  ;;  %v327_v4 = vld [vmem:[#allocation3] sm:$0xff]  ;;  %v589_v11 = vld [vmem:[%s1333_s3 + $0xd0] sm:$0xff]  ;;  %v586_v14 = vld [vmem:[%s1333_s3 + $0xb8] sm:$0xff] }
  0x26   : > { %494 = vmatprep.subr.mxu1 %v336_v52  ;;  %418 = vmatpush1.msra.mxu0 %v367_v54  ;;  %v588_v12 = vld [vmem:[%s1333_s3 + $0xc8] sm:$0xff]  ;;  %v585_v15 = vld [vmem:[%s1333_s3 + $0xb0] sm:$0xff]  ;;  %v583_v17 = vld [vmem:[%s1333_s3 + $0xa0] sm:$0xff] }
  0x27   : > { %495 = vmatpush1.msra.mxu1 %v335_v55  ;;  %419 = vmatprep.subr.mxu0 %v366_v56  ;;  %v584_v16 = vld [vmem:[%s1333_s3 + $0xa8] sm:$0xff]  ;;  %v582_v18 = vld [vmem:[%s1333_s3 + $0x98] sm:$0xff]  ;;  %v581_v19 = vld [vmem:[%s1333_s3 + $0x90] sm:$0xff] }
  0x28   : > { %496 = vmatprep.subr.mxu1 %v334_v57  ;;  %420 = vmatpush1.msra.mxu0 %v365_v58  ;;  %v580_v20 = vld [vmem:[%s1333_s3 + $0x88] sm:$0xff]  ;;  %v579_v21 = vld [vmem:[%s1333_s3 + $0x80] sm:$0xff]  ;;  %v578_v22 = vld [vmem:[%s1333_s3 + $0x78] sm:$0xff] }
  0x29   : > { %497 = vmatpush1.msra.mxu1 %v333_v59  ;;  %421 = vmatprep.subr.mxu0 %v364_v60  ;;  %v577_v23 = vld [vmem:[%s1333_s3 + $0x70] sm:$0xff]  ;;  %v576_v24 = vld [vmem:[%s1333_s3 + $0x68] sm:$0xff]  ;;  %v575_v25 = vld [vmem:[%s1333_s3 + $0x60] sm:$0xff] }
  0x2a   : > { %498 = vmatprep.subr.mxu1 %v332_v61  ;;  %422 = vmatpush1.msra.mxu0 %v363_v62  ;;  %v574_v26 = vld [vmem:[%s1333_s3 + $0x58] sm:$0xff]  ;;  %v573_v27 = vld [vmem:[%s1333_s3 + $0x50] sm:$0xff]  ;;  %v572_v28 = vld [vmem:[%s1333_s3 + $0x48] sm:$0xff] }
  0x2b   : > { %499 = vmatpush1.msra.mxu1 %v331_v63  ;;  %423 = vmatprep.subr.mxu0 %v362_v0  ;;  %v571_v29 = vld [vmem:[%s1333_s3 + $0x40] sm:$0xff]  ;;  %v570_v30 = vld [vmem:[%s1333_s3 + $0x38] sm:$0xff]  ;;  %v569_v31 = vld [vmem:[%s1333_s3 + $0x30] sm:$0xff]  ;;  %v597_v0 = vlaneseq }
  0x2c   : > { %500 = vmatprep.subr.mxu1 %v330_v1  ;;  %424 = vmatpush1.msra.mxu0 %v361_v2  ;;  %v568_v32 = vld [vmem:[%s1333_s3 + $0x28] sm:$0xff]  ;;  %v567_v33 = vld [vmem:[%s1333_s3 + $0x20] sm:$0xff]  ;;  %v566_v34 = vld [vmem:[%s1333_s3 + $0x18] sm:$0xff] }
  0x2d   : > { %501 = vmatpush1.msra.mxu1 %v329_v3  ;;  %534 = vmatprep.mubr.f32.mxu1 %v938_v6  ;;  %v565_v35 = vld [vmem:[%s1333_s3 + $0x10] sm:$0xff]  ;;  %v564_v36 = vld [vmem:[%s1333_s3 + $0x8] sm:$0xff]  ;;  %v563_v37 = vld [vmem:[%s1333_s3] sm:$0xff]  ;;  %v598_v1 = vshrl.u32 %v597_v0, 7 }
  0x2e   : > { %458 = vmatmul.mubr.f32.vlgmr.msra.gmra.mxu0 %v1149_v49  ;;  %535 = vmatmul.mubr.f32.vlgmr.msra.gmra.mxu1 %v327_v4  ;;  %v595_v3 = vld [vmem:[%s1334_s4] sm:$0x3] }
  0x2f   : > { %463 = vmatprep.mubr.f32.mxu0 %v938_v6  ;;  %540 = vmatprep.mubr.f32.mxu1 %v938_v6  ;;  %v599_v2 = vsub.s32 0, %v598_v1  ;;  %v603_v4 = vsub.s32 1, %v598_v1 }
  0x30   : > { %607 = vmatprep.subr.mxu0 %v594_v7  ;;  %845 = vmatprep.subr.mxu1 %v594_v7 }
  0x31   : > { %608 = vmatpush1.msra.mxu0 %v593_v8  ;;  %861 = vmatpush1.msra.mxu1 %v593_v8  ;;  %v604_v7 = vrot.slane %v595_v3, %v603_v4 }
  0x32   : > { %464 = vmatmul.mubr.f32.gmra.mxu0 %v1151_v50  ;;  %541 = vmatmul.mubr.f32.gmra.mxu1 %v328_v5  ;;  %v600_v5 = vrot.slane %v595_v3, %v599_v2 }
  0x33   : > { %671 = vmatprep.mubr.f32.mxu0 %v938_v6  ;;  %677 = vmatprep.mubr.f32.mxu1 %v938_v6  ;;  %v591_v6 = vld [vmem:[%s1333_s3 + $0xe0] sm:$0xff] }
  0x34   : > { %609 = vmatprep.subr.mxu0 %v592_v9  ;;  %846 = vmatprep.subr.mxu1 %v592_v9 }
  0x35   : > { %610 = vmatpush1.msra.mxu0 %v591_v6  ;;  %862 = vmatpush1.msra.mxu1 %v591_v6 }
  0x36   : > { %611 = vmatprep.subr.mxu0 %v590_v10  ;;  %847 = vmatprep.subr.mxu1 %v590_v10 }
  0x37   : > { %612 = vmatpush1.msra.mxu0 %v589_v11  ;;  %863 = vmatpush1.msra.mxu1 %v589_v11 }
  0x38   : > { %613 = vmatprep.subr.mxu0 %v588_v12  ;;  %848 = vmatprep.subr.mxu1 %v588_v12 }
  0x39   : > { %614 = vmatpush1.msra.mxu0 %v587_v13  ;;  %864 = vmatpush1.msra.mxu1 %v587_v13 }
  0x3a   : > { %615 = vmatprep.subr.mxu0 %v586_v14  ;;  %849 = vmatprep.subr.mxu1 %v586_v14 }
  0x3b   : > { %616 = vmatpush1.msra.mxu0 %v585_v15  ;;  %865 = vmatpush1.msra.mxu1 %v585_v15 }
  0x3c   : > { %617 = vmatprep.subr.mxu0 %v584_v16  ;;  %850 = vmatprep.subr.mxu1 %v584_v16 }
  0x3d   : > { %618 = vmatpush1.msra.mxu0 %v583_v17  ;;  %866 = vmatpush1.msra.mxu1 %v583_v17 }
  0x3e   : > { %619 = vmatprep.subr.mxu0 %v582_v18  ;;  %851 = vmatprep.subr.mxu1 %v582_v18 }
  0x3f   : > { %620 = vmatpush1.msra.mxu0 %v581_v19  ;;  %867 = vmatpush1.msra.mxu1 %v581_v19 }
  0x40   : > { %621 = vmatprep.subr.mxu0 %v580_v20  ;;  %852 = vmatprep.subr.mxu1 %v580_v20 }
  0x41   : > { %622 = vmatpush1.msra.mxu0 %v579_v21  ;;  %868 = vmatpush1.msra.mxu1 %v579_v21 }
  0x42   : > { %623 = vmatprep.subr.mxu0 %v578_v22  ;;  %853 = vmatprep.subr.mxu1 %v578_v22 }
  0x43   : > { %624 = vmatpush1.msra.mxu0 %v577_v23  ;;  %869 = vmatpush1.msra.mxu1 %v577_v23 }
  0x44   : > { %625 = vmatprep.subr.mxu0 %v576_v24  ;;  %854 = vmatprep.subr.mxu1 %v576_v24 }
  0x45   : > { %626 = vmatpush1.msra.mxu0 %v575_v25  ;;  %870 = vmatpush1.msra.mxu1 %v575_v25 }
  0x46   : > { %627 = vmatprep.subr.mxu0 %v574_v26  ;;  %855 = vmatprep.subr.mxu1 %v574_v26 }
  0x47   : > { %628 = vmatpush1.msra.mxu0 %v573_v27  ;;  %871 = vmatpush1.msra.mxu1 %v573_v27 }
  0x48   : > { %629 = vmatprep.subr.mxu0 %v572_v28  ;;  %856 = vmatprep.subr.mxu1 %v572_v28 }
  0x49   : > { %630 = vmatpush1.msra.mxu0 %v571_v29  ;;  %872 = vmatpush1.msra.mxu1 %v571_v29 }
  0x4a   : > { %631 = vmatprep.subr.mxu0 %v570_v30  ;;  %857 = vmatprep.subr.mxu1 %v570_v30 }
  0x4b   : > { %632 = vmatpush1.msra.mxu0 %v569_v31  ;;  %873 = vmatpush1.msra.mxu1 %v569_v31 }
  0x4c   : > { %633 = vmatprep.subr.mxu0 %v568_v32  ;;  %858 = vmatprep.subr.mxu1 %v568_v32 }
  0x4d   : > { %634 = vmatpush1.msra.mxu0 %v567_v33  ;;  %874 = vmatpush1.msra.mxu1 %v567_v33 }
  0x4e   : > { %635 = vmatprep.subr.mxu0 %v566_v34  ;;  %859 = vmatprep.subr.mxu1 %v566_v34 }
  0x4f   : > { %636 = vmatpush1.msra.mxu0 %v565_v35  ;;  %875 = vmatpush1.msra.mxu1 %v565_v35 }
  0x50   : > { %637 = vmatprep.subr.mxu0 %v564_v36  ;;  %860 = vmatprep.subr.mxu1 %v564_v36 }
  0x51   : > { %638 = vmatpush1.msra.mxu0 %v563_v37  ;;  %876 = vmatpush1.msra.mxu1 %v563_v37 }
  0xee   : > { %v459_v38 = vpop.f32.mrf.mxu0  ;;  %v536_v39 = vpop.f32.mrf.mxu1 }
  0xef   : > { %v537_v52 = vadd.f32 %v536_v39, %v459_v38 }
  0xf0   : > { %v461_v40 = vpop.f32.mrf.mxu0  ;;  %v538_v41 = vpop.f32.mrf.mxu1 }
  0xf1   : > { %v539_v42 = vadd.f32 %v538_v41, %v461_v40 }
  0xf2   : > { %v465_v43 = vpop.f32.mrf.mxu0  ;;  %v542_v44 = vpop.f32.mrf.mxu1 }
  0xf3   : > { %v838_v45 = vmul.f32 -1.442695, %v539_v42  ;;  %v543_v55 = vadd.f32 %v542_v44, %v465_v43 }
  0xf4   : > { %v467_v46 = vpop.f32.mrf.mxu0  ;;  %v544_v47 = vpop.f32.mrf.mxu1 }
  0xf5   : > { %902 = vpow2.f32 %v838_v45  ;;  %v545_v48 = vadd.f32 %v544_v47, %v467_v46 }
  0xf7   : > { %v839_v51 = vmul.f32 -1.442695, %v545_v48 }
  0xf9   : > { %904 = vpow2.f32 %v839_v51 }
  0xfa   : > { %906 = vtanh.f32 %v537_v52 }
 0x102   : > { %v903_v53 = vpop.eup %902 }
 0x103   : > { %v555_v54 = vadd.f32 1.0, %v903_v53 }
 0x105   : > { %908 = vrcp.f32 %v555_v54 }
 0x106   : > { %v905_v56 = vpop.eup %904  ;;  %910 = vtanh.f32 %v543_v55 }
 0x107   : > { %v556_v57 = vadd.f32 1.0, %v905_v56  ;;  %v907_v58 = vpop.eup %906 }
 0x109   : > { %912 = vrcp.f32 %v556_v57 }
 0x112   : > { %v909_v59 = vpop.eup %908 }
 0x113   : > { %v561_v60 = vmul.f32 %v909_v59, %v907_v58  ;;  %v911_v61 = vpop.eup %910 }
 0x115   : > { %672 = vmatmul.mubr.f32.vlgmr.msra.gmra.mxu0 %v561_v60 }
 0x116   : > { %v913_v62 = vpop.eup %912 }
 0x117   : > { %v562_v63 = vmul.f32 %v913_v62, %v911_v61 }
 0x119   : > { %678 = vmatmul.mubr.f32.vlgmr.msra.gmra.mxu1 %v562_v63 }
 0x1d5   : > { %v673_v8 = vpop.f32.mrf.mxu0 }
 0x1d6   : > { %v674_v9 = vadd.f32 %v673_v8, %v600_v5 }
 0x1d7   : > { %v675_v6 = vpop.f32.mrf.mxu0 }
 0x1d8   : > { %v684_v10 = vadd.f32 %v674_v9, %v1149_v49  ;;  %v676_v11 = vadd.f32 %v675_v6, %v604_v7 }
 0x1d9   : > { %v679_v12 = vpop.f32.mrf.mxu1 }
 0x1da   : > { %686 = vst [vmem:[%s303_s21] sm:$0xff] %v684_v10  ;;  %688 = vst [vmem:[%s313_s27] sm:$0xff] %v676_v11  ;;  %v680_v13 = vadd.f32 %v679_v12, %v600_v5 }
 0x1db   : > { %v681_v14 = vpop.f32.mrf.mxu1 }
 0x1dc   : > { %v685_v15 = vadd.f32 %v680_v13, %v1151_v50  ;;  %v682_v16 = vadd.f32 %v681_v14, %v604_v7 }
 0x1de   : > { %687 = vst [vmem:[%s303_s21 + $0x8] sm:$0xff] %v685_v15  ;;  %689 = vst [vmem:[%s313_s27 + $0x8] sm:$0xff] %v682_v16 }
 0x1df PF: > { %s17_s23 = sadd.s32 1, %s936_s23   ;;  %s1337_s21 = smov %s932_s22 }
 0x1e0   : > { %p14_p5 = scmp.ge.s32.totalorder %s17_s23, 4   ;;  %s1338_s22 = smov %s1340_s24 }
 0x1e2   :  { %16 = sbr.rel (!%p14_p5) target bundleno = 2 (0x2), region = 86 }

</bundles_post_ra>
